<compile_context>
chip_gen: v7x
topology: tpu7x:2x2x1
jax: 0.10.0
libtpu: 0.0.40
codegen_flags: <defaults>
</compile_context>

<pallas_src>
import functools

import jax
import jax.numpy as jnp
from jax.experimental import pallas as pl
from jax.experimental.pallas import tpu as pltpu


# ---------------------------------------------------------------------------
# Parameter folding (plain JAX glue): Conv1x1(bias=False) + BN(eval) -> W_eff, b_eff
# ---------------------------------------------------------------------------
def _fold_conv_bn(w, gamma, beta, mean, var, eps=1e-5):
    # w: (C_out, C_in).  y = scale * (w @ x) + (beta - mean * scale)
    scale = gamma / jnp.sqrt(var + eps)
    w_eff = w * scale[:, None]                        # (C_out, C_in)
    b_eff = (beta - mean * scale)[:, None]            # (C_out, 1), broadcasts over N
    return w_eff.astype(jnp.float32), b_eff.astype(jnp.float32)


def init_params(key, c_in, key_ch, c_out):
    ks = iter(jax.random.split(key, 64))

    def conv_bn(cin, cout):
        w = jax.random.normal(next(ks), (cout, cin), jnp.float32) * 0.3
        gamma = 1.0 + 0.1 * jax.random.normal(next(ks), (cout,), jnp.float32)
        beta = 0.1 * jax.random.normal(next(ks), (cout,), jnp.float32)
        mean = 0.1 * jax.random.normal(next(ks), (cout,), jnp.float32)
        var = 0.5 + jnp.abs(jax.random.normal(next(ks), (cout,), jnp.float32))
        return _fold_conv_bn(w, gamma, beta, mean, var)

    p = {}
    p["wp1"], p["bp1"] = conv_bn(c_in, key_ch)        # f_pixel stage 1
    p["wp2"], p["bp2"] = conv_bn(key_ch, key_ch)      # f_pixel stage 2
    p["wo1"], p["bo1"] = conv_bn(c_in, key_ch)        # f_object stage 1
    p["wo2"], p["bo2"] = conv_bn(key_ch, key_ch)      # f_object stage 2
    p["wd"], p["bd"] = conv_bn(c_in, key_ch)          # f_down
    p["wu"], p["bu"] = conv_bn(key_ch, c_in)          # f_up
    p["wout"], p["bout"] = conv_bn(2 * c_in, c_out)   # conv_bn_dropout
    return p


# ---------------------------------------------------------------------------
# Pallas kernel: OCR pixel-side forward for one (batch, N-tile) grid cell.
# Channel-first in kernel: channels on sublanes, spatial N on lanes (lane-dense).
# ---------------------------------------------------------------------------
def ocr_kernel(feats_ref, kT_ref, v_ref, wpack_ref, bpack_ref, out_ref, *,
               c_in, key_ch, c_out, compute_dtype):
    f32 = jnp.float32
    relu = lambda t: jnp.maximum(t, 0.0)

    def mm(w, t):  # (Co, Ci) @ (Ci, L) -> (Co, L); MXU with f32 accumulation
        return jnp.dot(w.astype(compute_dtype), t.astype(compute_dtype),
                       preferred_element_type=f32)

    # --- unpack the two resident weight/bias slabs with static slices ----------
    Wk = wpack_ref[...].astype(f32)                    # (sum_rows, cmax)
    bv = bpack_ref[...].astype(f32)                    # (sum_bias, 1)
    r = 0
    wp1 = Wk[r:r + key_ch, :c_in];   r += key_ch      # f_pixel stage 1
    wp2 = Wk[r:r + key_ch, :key_ch]; r += key_ch      # f_pixel stage 2 (scale folded)
    wu = Wk[r:r + c_in, :key_ch];    r += c_in        # f_up
    woc = Wk[r:r + c_out, :c_in];    r += c_out       # conv_out, context half
    wox = Wk[r:r + c_out, :c_in];    r += c_out       # conv_out, feats half
    s = 0
    bp1 = bv[s:s + key_ch];  s += key_ch
    bp2 = bv[s:s + key_ch];  s += key_ch
    bu = bv[s:s + c_in];     s += c_in
    bout = bv[s:s + c_out];  s += c_out

    x = feats_ref[...].astype(f32)                     # (c_in, TILE_N)
    kT = kT_ref[...].astype(f32)                       # (M, K)  precomputed key^T
    v = v_ref[...].astype(f32)                         # (K, M)  precomputed value

    # f_pixel(x) -> query (K, TILE_N).  key_channels**-0.5 is pre-folded into wp2/bp2.
    q = relu(mm(wp1, x) + bp1)
    q = relu(mm(wp2, q) + bp2)

    # sim[m, n] = sum_c kT[m, c] * q[c, n]  -> (M, TILE_N); plain matmul, N on lanes.
    sim = mm(kT, q)

    # softmax over the object axis M (sublane reduction), f32 throughout,
    # exact division (tiny denominator, keeps parity with the reference).
    sim = sim - jnp.max(sim, axis=0, keepdims=True)
    e = jnp.exp(sim)
    attn = e / jnp.sum(e, axis=0, keepdims=True)

    # context[c, n] = sum_m v[c, m] * attn[m, n] -> (K, TILE_N), then f_up.
    ctx = jnp.dot(v.astype(compute_dtype), attn.astype(compute_dtype),
                  preferred_element_type=f32)
    ctx = relu(mm(wu, ctx) + bu)                       # (c_in, TILE_N)

    # conv_bn_dropout(cat([context, feats], C)) == Woc @ ctx + Wox @ x + b  (eval)
    out = relu(mm(woc, ctx) + mm(wox, x) + bout)
    out_ref[...] = out.astype(out_ref.dtype)           # (c_out, TILE_N), lane-dense


# ---------------------------------------------------------------------------
# Tiling: VMEM-formula-driven TILE_N, 128-lane aligned, padded N, >=2 grid cells
# ---------------------------------------------------------------------------
def _pick_tile_n(n, batch, bytes_per_col, vmem_budget=12 << 20, hard_cap=16384):
    cols128 = -(-n // 128)                                   # lane-groups needed
    cap128 = max(1, min(hard_cap, vmem_budget // max(bytes_per_col, 1)) // 128)
    n_tiles = -(-cols128 // cap128)                          # minimal #tiles for VMEM
    tile = (-(-cols128 // n_tiles)) * 128                    # balanced, 128-aligned
    # Feed both v7x TensorCores when it is free: want >= 2 total grid cells.
    if batch * n_tiles < 2 and tile % 256 == 0:
        tile //= 2
        n_tiles *= 2
    return tile, tile * n_tiles                              # (tile_n, padded N)


# ---------------------------------------------------------------------------
# Wrapper: layout, proxy-path hoist, weight packing, pallas_call
# ---------------------------------------------------------------------------
def spatial_ocr(feats, proxy, params, key_channels, *, compute_dtype=jnp.float32):
    B, C_in, H, W = feats.shape
    _, _, Hp, Wp = proxy.shape
    N, M = H * W, Hp * Wp
    C_out = params["wout"].shape[0]
    K = key_channels

    # NCHW -> (B, C, N): free reshape; channels on sublanes, spatial N on lanes.
    feats_cn = feats.reshape(B, C_in, N)
    proxy_cn = proxy.reshape(B, C_in, M)

    # --- hoisted proxy path: key/value are tiny per-batch einsums (plain JAX) ---
    def conv(w, b, t):                                  # folded Conv1x1+BN+ReLU
        return jnp.maximum(jnp.einsum("oc,bcm->bom", w, t) + b[None], 0.0)

    k = conv(params["wo2"], params["bo2"],
             conv(params["wo1"], params["bo1"], proxy_cn))      # (B, K, M)
    v = conv(params["wd"], params["bd"], proxy_cn)              # (B, K, M)
    kT = jnp.transpose(k, (0, 2, 1))                            # (B, M, K)

    # Fold the softmax key_channels**-0.5 scale into f_pixel stage 2
    # (ReLU(a*z) == a*ReLU(z) for a > 0).
    key_scale = jnp.float32(key_channels) ** -0.5
    wp2 = params["wp2"] * key_scale
    bp2 = params["bp2"] * key_scale
    # Split the output 1x1 conv across the [context, feats] channel concat.
    wout_ctx = params["wout"][:, :C_in]
    wout_x = params["wout"][:, C_in:]

    # --- pack 5 weight matrices / 4 bias vectors into two resident slabs --------
    cmax = max(C_in, K)

    def padw(w):
        return jnp.pad(w, ((0, 0), (0, cmax - w.shape[1])))

    wpack = jnp.concatenate(
        [padw(params["wp1"]), padw(wp2), padw(params["wu"]),
         padw(wout_ctx), padw(wout_x)], axis=0)                 # (sum_rows, cmax)
    bpack = jnp.concatenate(
        [params["bp1"], bp2, params["bu"], params["bout"]], axis=0)  # (sum_bias, 1)

    # --- tile N: VMEM-formula cap, lane-aligned, padded to a tile multiple ------
    bytes_per_col = 4 * (2 * (C_in + C_out)            # streamed feats/out, 2 buffers
                         + 2 * K + M + C_in + C_out)   # f32 intermediates
    tile_n, n_pad = _pick_tile_n(N, B, bytes_per_col)
    if n_pad != N:
        # Pad N so every store is an unmasked lane-dense vst; slice back after.
        feats_cn = jnp.pad(feats_cn, ((0, 0), (0, 0), (0, n_pad - N)))
    grid = (B, n_pad // tile_n)

    out_cn = pl.pallas_call(
        functools.partial(ocr_kernel, c_in=C_in, key_ch=K, c_out=C_out,
                          compute_dtype=compute_dtype),
        out_shape=jax.ShapeDtypeStruct((B, C_out, n_pad), jnp.float32),
        grid=grid,
        in_specs=[
            # streamed per grid step
            pl.BlockSpec((None, C_in, tile_n), lambda b, n: (b, 0, n)),
            # per-batch residents (re-DMAed only when the batch index changes)
            pl.BlockSpec((None, M, K), lambda b, n: (b, 0, 0)),
            pl.BlockSpec((None, K, M), lambda b, n: (b, 0, 0)),
            # grid-constant residents (fetched once)
            pl.BlockSpec(wpack.shape, lambda b, n: (0, 0)),
            pl.BlockSpec(bpack.shape, lambda b, n: (0, 0)),
        ],
        out_specs=pl.BlockSpec((None, C_out, tile_n), lambda b, n: (b, 0, n)),
        compiler_params=pltpu.CompilerParams(
            dimension_semantics=("parallel", "parallel")),
    )(feats_cn, kT, v, wpack, bpack)

    return out_cn[:, :, :N].reshape(B, C_out, H, W)     # NCHW, free reshape


# ---------------------------------------------------------------------------
# Pure-JAX reference (eval-mode semantics, unfolded softmax scale) for validation
# ---------------------------------------------------------------------------
def reference(feats, proxy, params, key_channels):
    relu = lambda t: jnp.maximum(t, 0.0)
    B, C_in, H, W = feats.shape
    x = feats.reshape(B, C_in, -1)                      # (B, C, N)
    p = proxy.reshape(B, C_in, -1)                      # (B, C, M)

    def conv(w, b, t):                                  # folded Conv1x1+BN+ReLU
        return relu(jnp.einsum("oc,bcl->bol", w, t) + b[None])

    q = conv(params["wp2"], params["bp2"], conv(params["wp1"], params["bp1"], x))
    k = conv(params["wo2"], params["bo2"], conv(params["wo1"], params["bo1"], p))
    v = conv(params["wd"], params["bd"], p)
    sim = jnp.einsum("bkn,bkm->bnm", q, k) * key_channels ** -0.5
    attn = jax.nn.softmax(sim, axis=-1)
    ctx = jnp.einsum("bnm,bkm->bkn", attn, v)
    ctx = conv(params["wu"], params["bu"], ctx)
    cat = jnp.concatenate([ctx, x], axis=1)
    out = conv(params["wout"], params["bout"], cat)
    return out.reshape(B, -1, H, W)


if __name__ == "__main__":
    # SpatialOCR_Module(in_channels=4, key_channels=4, out_channels=8, scale=1).eval()
    B, C_in, KEY_CH, C_out = 2, 4, 4, 8
    H = W = 16            # feats spatial -> N = 256 (two 128-lane groups per batch)
    Hp, Wp = 8, 1         # proxy (object-region) spatial -> M = 8

    root = jax.random.PRNGKey(0)
    k_feat, k_proxy, k_param = jax.random.split(root, 3)
    feats = jax.random.normal(k_feat, (B, C_in, H, W), jnp.float32)
    proxy_feats = jax.random.normal(k_proxy, (B, C_in, Hp, Wp), jnp.float32)
    params = init_params(k_param, C_in, KEY_CH, C_out)

    out = spatial_ocr(feats, proxy_feats, params, KEY_CH)
    out = jax.block_until_ready(out)
    assert out.shape == (B, C_out, H, W), out.shape

    ref = reference(feats, proxy_feats, params, KEY_CH)
    max_err = float(jnp.max(jnp.abs(out - ref)))
    assert jnp.allclose(out, ref, atol=1e-4, rtol=1e-4), max_err

    # TODO(synk): Dropout2d(p=0.1) and BatchNorm are eval-mode here (identity /
    # folded running stats); the scale>1 MaxPool + bilinear-upsample branch of
    # ObjectAttentionBlock2D is not implemented (module default scale=1).
    print("KERNEL_OK")
</pallas_src>

<mosaic_0001>
module attributes {stable_mosaic.version = 11 : i64} {
  func.func @ocr_kernel(%arg0: i32, %arg1: i32, %arg2: memref<1x4x256xf32, #tpu.memory_space<vmem>>, %arg3: memref<1x8x4xf32, #tpu.memory_space<vmem>>, %arg4: memref<1x4x8xf32, #tpu.memory_space<vmem>>, %arg5: memref<28x4xf32, #tpu.memory_space<vmem>>, %arg6: memref<20x1xf32, #tpu.memory_space<vmem>>, %arg7: memref<1x8x256xf32, #tpu.memory_space<vmem>>) attributes {dimension_semantics = [#tpu.dimension_semantics<parallel>, #tpu.dimension_semantics<parallel>], iteration_bounds = array<i64: 2, 1>, scalar_prefetch = 0 : i64, scratch_operands = 0 : i64, tpu.core_type = #tpu.core_type<tc>, window_params = [{transform_indices = @transform_0, window_bounds = array<i64: 1, 4, 256>}, {transform_indices = @transform_1, window_bounds = array<i64: 1, 8, 4>}, {transform_indices = @transform_2, window_bounds = array<i64: 1, 4, 8>}, {pipeline_mode = #tpu.pipeline_mode<synchronous>, transform_indices = @transform_3, window_bounds = array<i64: 28, 4>}, {pipeline_mode = #tpu.pipeline_mode<synchronous>, transform_indices = @transform_4, window_bounds = array<i64: 20, 1>}, {transform_indices = @transform_5, window_bounds = array<i64: 1, 8, 256>}]} {
    %c0 = arith.constant 0 : index
    %c0_0 = arith.constant 0 : index
    %0 = vector.load %arg5[%c0, %c0_0] : memref<28x4xf32, #tpu.memory_space<vmem>>, vector<28x4xf32>
    %c0_1 = arith.constant 0 : index
    %c0_2 = arith.constant 0 : index
    %1 = vector.load %arg6[%c0_1, %c0_2] : memref<20x1xf32, #tpu.memory_space<vmem>>, vector<20x1xf32>
    %2 = vector.extract_strided_slice %0 {offsets = [0, 0], sizes = [4, 4], strides = [1, 1]} : vector<28x4xf32> to vector<4x4xf32>
    %3 = vector.extract_strided_slice %0 {offsets = [4, 0], sizes = [4, 4], strides = [1, 1]} : vector<28x4xf32> to vector<4x4xf32>
    %4 = vector.extract_strided_slice %0 {offsets = [8, 0], sizes = [4, 4], strides = [1, 1]} : vector<28x4xf32> to vector<4x4xf32>
    %5 = vector.extract_strided_slice %0 {offsets = [12, 0], sizes = [8, 4], strides = [1, 1]} : vector<28x4xf32> to vector<8x4xf32>
    %6 = vector.extract_strided_slice %0 {offsets = [20, 0], sizes = [8, 4], strides = [1, 1]} : vector<28x4xf32> to vector<8x4xf32>
    %7 = vector.extract_strided_slice %1 {offsets = [0, 0], sizes = [4, 1], strides = [1, 1]} : vector<20x1xf32> to vector<4x1xf32>
    %8 = vector.extract_strided_slice %1 {offsets = [4, 0], sizes = [4, 1], strides = [1, 1]} : vector<20x1xf32> to vector<4x1xf32>
    %9 = vector.extract_strided_slice %1 {offsets = [8, 0], sizes = [4, 1], strides = [1, 1]} : vector<20x1xf32> to vector<4x1xf32>
    %10 = vector.extract_strided_slice %1 {offsets = [12, 0], sizes = [8, 1], strides = [1, 1]} : vector<20x1xf32> to vector<8x1xf32>
    %c0_3 = arith.constant 0 : index
    %c0_4 = arith.constant 0 : index
    %c0_5 = arith.constant 0 : index
    %11 = vector.load %arg2[%c0_3, %c0_4, %c0_5] : memref<1x4x256xf32, #tpu.memory_space<vmem>>, vector<1x4x256xf32>
    %12 = vector.shape_cast %11 : vector<1x4x256xf32> to vector<4x256xf32>
    %c0_6 = arith.constant 0 : index
    %c0_7 = arith.constant 0 : index
    %c0_8 = arith.constant 0 : index
    %13 = vector.load %arg3[%c0_6, %c0_7, %c0_8] : memref<1x8x4xf32, #tpu.memory_space<vmem>>, vector<1x8x4xf32>
    %14 = vector.shape_cast %13 : vector<1x8x4xf32> to vector<8x4xf32>
    %c0_9 = arith.constant 0 : index
    %c0_10 = arith.constant 0 : index
    %c0_11 = arith.constant 0 : index
    %15 = vector.load %arg4[%c0_9, %c0_10, %c0_11] : memref<1x4x8xf32, #tpu.memory_space<vmem>>, vector<1x4x8xf32>
    %16 = vector.shape_cast %15 : vector<1x4x8xf32> to vector<4x8xf32>
    %cst = arith.constant dense<0.000000e+00> : vector<4x256xf32>
    %17 = tpu.matmul %2, %12, %cst {dimension_numbers = #tpu.dot_dimension_numbers<[1], [0], [0], [1], [0, 0, 1, 1], [], []>} : vector<4x4xf32>, vector<4x256xf32>, vector<4x256xf32> -> vector<4x256xf32>
    %18 = vector.broadcast %7 : vector<4x1xf32> to vector<4x256xf32>
    %19 = arith.addf %17, %18 : vector<4x256xf32>
    %cst_12 = arith.constant 0.000000e+00 : f32
    %20 = vector.broadcast %cst_12 : f32 to vector<4x256xf32>
    %21 = arith.maximumf %19, %20 : vector<4x256xf32>
    %cst_13 = arith.constant dense<0.000000e+00> : vector<4x256xf32>
    %22 = tpu.matmul %3, %21, %cst_13 {dimension_numbers = #tpu.dot_dimension_numbers<[1], [0], [0], [1], [0, 0, 1, 1], [], []>} : vector<4x4xf32>, vector<4x256xf32>, vector<4x256xf32> -> vector<4x256xf32>
    %23 = vector.broadcast %8 : vector<4x1xf32> to vector<4x256xf32>
    %24 = arith.addf %22, %23 : vector<4x256xf32>
    %cst_14 = arith.constant 0.000000e+00 : f32
    %25 = vector.broadcast %cst_14 : f32 to vector<4x256xf32>
    %26 = arith.maximumf %24, %25 : vector<4x256xf32>
    %cst_15 = arith.constant dense<0.000000e+00> : vector<8x256xf32>
    %27 = tpu.matmul %14, %26, %cst_15 {dimension_numbers = #tpu.dot_dimension_numbers<[1], [0], [0], [1], [0, 0, 1, 1], [], []>} : vector<8x4xf32>, vector<4x256xf32>, vector<8x256xf32> -> vector<8x256xf32>
    %cst_16 = arith.constant dense<0xFF800000> : vector<256xf32>
    %28 = vector.multi_reduction <maximumf>, %27, %cst_16 [0] : vector<8x256xf32> to vector<256xf32>
    %29 = vector.shape_cast %28 : vector<256xf32> to vector<1x256xf32>
    %30 = vector.broadcast %29 : vector<1x256xf32> to vector<8x256xf32>
    %31 = arith.subf %27, %30 : vector<8x256xf32>
    %32 = math.exp %31 : vector<8x256xf32>
    %cst_17 = arith.constant dense<0.000000e+00> : vector<256xf32>
    %33 = vector.multi_reduction <add>, %32, %cst_17 [0] : vector<8x256xf32> to vector<256xf32>
    %34 = vector.shape_cast %33 : vector<256xf32> to vector<1x256xf32>
    %35 = vector.broadcast %34 : vector<1x256xf32> to vector<8x256xf32>
    %36 = arith.divf %32, %35 : vector<8x256xf32>
    %cst_18 = arith.constant dense<0.000000e+00> : vector<4x256xf32>
    %37 = tpu.matmul %16, %36, %cst_18 {dimension_numbers = #tpu.dot_dimension_numbers<[1], [0], [0], [1], [0, 0, 1, 1], [], []>} : vector<4x8xf32>, vector<8x256xf32>, vector<4x256xf32> -> vector<4x256xf32>
    %cst_19 = arith.constant dense<0.000000e+00> : vector<4x256xf32>
    %38 = tpu.matmul %4, %37, %cst_19 {dimension_numbers = #tpu.dot_dimension_numbers<[1], [0], [0], [1], [0, 0, 1, 1], [], []>} : vector<4x4xf32>, vector<4x256xf32>, vector<4x256xf32> -> vector<4x256xf32>
    %39 = vector.broadcast %9 : vector<4x1xf32> to vector<4x256xf32>
    %40 = arith.addf %38, %39 : vector<4x256xf32>
    %cst_20 = arith.constant 0.000000e+00 : f32
    %41 = vector.broadcast %cst_20 : f32 to vector<4x256xf32>
    %42 = arith.maximumf %40, %41 : vector<4x256xf32>
    %cst_21 = arith.constant dense<0.000000e+00> : vector<8x256xf32>
    %43 = tpu.matmul %5, %42, %cst_21 {dimension_numbers = #tpu.dot_dimension_numbers<[1], [0], [0], [1], [0, 0, 1, 1], [], []>} : vector<8x4xf32>, vector<4x256xf32>, vector<8x256xf32> -> vector<8x256xf32>
    %cst_22 = arith.constant dense<0.000000e+00> : vector<8x256xf32>
    %44 = tpu.matmul %6, %12, %cst_22 {dimension_numbers = #tpu.dot_dimension_numbers<[1], [0], [0], [1], [0, 0, 1, 1], [], []>} : vector<8x4xf32>, vector<4x256xf32>, vector<8x256xf32> -> vector<8x256xf32>
    %45 = arith.addf %43, %44 : vector<8x256xf32>
    %46 = vector.broadcast %10 : vector<8x1xf32> to vector<8x256xf32>
    %47 = arith.addf %45, %46 : vector<8x256xf32>
    %cst_23 = arith.constant 0.000000e+00 : f32
    %48 = vector.broadcast %cst_23 : f32 to vector<8x256xf32>
    %49 = arith.maximumf %47, %48 : vector<8x256xf32>
    %c0_24 = arith.constant 0 : index
    %c0_25 = arith.constant 0 : index
    %c0_26 = arith.constant 0 : index
    %50 = vector.load %arg7[%c0_24, %c0_25, %c0_26] : memref<1x8x256xf32, #tpu.memory_space<vmem>>, vector<1x8x256xf32>
    %51 = vector.shape_cast %50 : vector<1x8x256xf32> to vector<8x256xf32>
    %52 = vector.shape_cast %49 : vector<8x256xf32> to vector<1x8x256xf32>
    tpu.vector_store %arg7[%c0_24, %c0_25, %c0_26], %52 {strides = array<i32>} : memref<1x8x256xf32, #tpu.memory_space<vmem>>, vector<1x8x256xf32>,
    return
  }
  func.func @transform_0(%arg0: i32, %arg1: i32) -> (i32, i32, i32) {
    %c0_i32 = arith.constant 0 : i32
    %c0_i32_0 = arith.constant 0 : i32
    return %arg0, %c0_i32, %arg1 : i32, i32, i32
  }
  func.func @transform_1(%arg0: i32, %arg1: i32) -> (i32, i32, i32) {
    %c0_i32 = arith.constant 0 : i32
    %c0_i32_0 = arith.constant 0 : i32
    %c0_i32_1 = arith.constant 0 : i32
    return %arg0, %c0_i32, %c0_i32_0 : i32, i32, i32
  }
  func.func @transform_2(%arg0: i32, %arg1: i32) -> (i32, i32, i32) {
    %c0_i32 = arith.constant 0 : i32
    %c0_i32_0 = arith.constant 0 : i32
    %c0_i32_1 = arith.constant 0 : i32
    return %arg0, %c0_i32, %c0_i32_0 : i32, i32, i32
  }
  func.func @transform_3(%arg0: i32, %arg1: i32) -> (i32, i32) {
    %c0_i32 = arith.constant 0 : i32
    %c0_i32_0 = arith.constant 0 : i32
    %c0_i32_1 = arith.constant 0 : i32
    return %c0_i32, %c0_i32_0 : i32, i32
  }
  func.func @transform_4(%arg0: i32, %arg1: i32) -> (i32, i32) {
    %c0_i32 = arith.constant 0 : i32
    %c0_i32_0 = arith.constant 0 : i32
    %c0_i32_1 = arith.constant 0 : i32
    return %c0_i32, %c0_i32_0 : i32, i32
  }
  func.func @transform_5(%arg0: i32, %arg1: i32) -> (i32, i32, i32) {
    %c0_i32 = arith.constant 0 : i32
    %c0_i32_0 = arith.constant 0 : i32
    return %arg0, %c0_i32, %arg1 : i32, i32, i32
  }
}

</mosaic_0001>

<bundles_post_ra>
// kernel: tpu_custom_call.1
= control target key start
LH: loop header
LB: loop body
LE: loop exit
PB: predicated region body
PF: predicated region fallthrough
CT: control target
= control target key end

     0   :  { %10 = vsyncpa [#allocation3], 0  ;;  %s1441_s0 = inlined_call_operand.vmem [shape: f32[2,4,256], index: 0, kind: input, shape index: {}]   ;;  %s1442_s1 = inlined_call_operand.vmem [shape: f32[2,8,4], index: 1, kind: input, shape index: {}]   ;;  %s1443_s2 = inlined_call_operand.vmem [shape: f32[2,4,8], index: 2, kind: input, shape index: {}]   ;;  %s1444_s3 = inlined_call_operand.vmem [shape: f32[28,4], index: 3, kind: input, shape index: {}]   ;;  %s1445_s4 = inlined_call_operand.vmem [shape: f32[20,1], index: 4, kind: input, shape index: {}]   ;;  %s1446_s5 = inlined_call_operand.hbm [shape: f32[2,8,256], index: 5, kind: output, shape index: {}]  }
   0x1   :  { %12 = vsyncpa [#allocation3 + $0x1], 0  ;;  %s1256_s18 = smov 0   ;;  %s1258_s19 = smov 0  }
   0x2   :  { %s1260_s20 = smov 0   ;;  %s1262_s21 = smov 0  }
   0x3   :  { %s1264_s22 = smov 0   ;;  %s1266_s23 = smov 0  }
   0x4 LB: > { %s1037_s24 = sadd.s32 4294967295, %s1221_s23   ;;  %s1038_s25 = sadd.s32 4294967294, %s1221_s23   ;;  %s1221_s23 = sphi %s1266_s23, %s18_s23   ;;  %s1217_s22 = sphi %s1264_s22, %s1453_s22   ;;  %s1213_s21 = sphi %s1262_s21, %s1452_s21   ;;  %s1209_s20 = sphi %s1260_s20, %s1451_s20   ;;  %s1205_s19 = sphi %s1258_s19, %s1450_s19   ;;  %s1201_s18 = sphi %s1256_s18, %s1449_s18  }
   0x5   : > { %s30_s26 = sadd.s32 1, %s1217_s22  ;;  %s161_s27 = sadd.s32 1, %s1209_s20 }
   0x6   : > { %p32_p0 = scmp.ge.s32.totalorder %s30_s26, 2  ;;  %p171_p1 = scmp.ne.s32.totalorder %s1209_s20, %s1205_s19 }
   0x7   : > { %p172_p2 = scmp.eq.s32.totalorder %s1037_s24, 1  ;;  %p177_p3 = scmp.ne.s32.totalorder %s1205_s19, %s1201_s18 }
   0x8   : > { %s1455_s26 = smov (%p32_p0, %s30_s26), 0  ;;  %p178_p5 = scmp.eq.s32.totalorder %s1038_s25, 1 }
   0x9   : > { %p1296_p4 = por %p172_p2, %p171_p1  ;;  %s156_s29 = ssub.s32 %s1217_s22, %s1455_s26 }
   0xa   : > { %p1041_p6 = scmp.ge.s32.totalorder %s1221_s23, 1  ;;  %p159_p7 = scmp.eq.s32.totalorder %s156_s29, 0 }
   0xb   : > { %p1303_p8 = por %p178_p5, %p177_p3  ;;  %p229_p9 = scmp.lt.s32.totalorder %s1221_s23, 3 }
   0xc   : > { %s1309_s6 = scalar_select %p159_p7, %s1209_s20, %s161_s27  }
   0xd   : > { %p230_p10 = pnand %p1041_p6, %p229_p9 }
   0xe   : > { %p270_p11 = scmp.lt.s32.totalorder (!%p230_p10), %s1213_s21, 1  ;;  %v1223_v0 = vmov (!%p230_p10), 0.0   ;;  %v1224_v1 = vmov (!%p230_p10), 0   ;;  %v292_v2 = vld [vmem:[%s1445_s4] sm:$0xff] (!%p230_p10)  ;;  %v294_v3 = vld [vmem:[%s1445_s4 + $0x10] sm:$0xf] (!%p230_p10) }
   0xf   : > { %233 = sbr.rel (%p230_p10) target bundleno = 1401 (0x579), region = 40  ;;  %378 = vmatprep.mubr.f32.mxu0 (!%p230_p10), %v1223_v0  ;;  %1132 = vset.pattern.permute.xlu0 (!%p230_p10), %v1224_v1  ;;  %v293_v4 = vld [vmem:[%s1445_s4 + $0x8] sm:$0xff] (!%p230_p10)  ;;  %vm309_vm0 = vcmask (!%p230_p10), 1043456   ;;  %v288_v7 = vld [vmem:[%s1444_s3] sm:$0xff] (!%p230_p10)  ;;  %vm305_vm1 = vcmask (!%p230_p10), 31744   ;;  %vm585_vm2 = vcmask (!%p230_p10), 64512  }
  0x10   : > { %300 = vperm.xlu0 (!%p230_p10), %1132, %v292_v2   ;;  %1133 = vset.pattern.permute.xlu1 (!%p230_p10), %v1224_v1  ;;  %v387_v13 = vrot.slane (!%p230_p10), %v288_v7, 4  ;;  %v289_v63 = vld [vmem:[%s1444_s3 + $0x8] sm:$0xff] (!%p230_p10)  ;;  %v290_v1 = vld [vmem:[%s1444_s3 + $0x10] sm:$0xff] (!%p230_p10)  ;;  %v291_v2 = vld [vmem:[%s1444_s3 + $0x18] sm:$0xf] (!%p230_p10)  ;;  %s266_s24 = sand.u32 (!%p230_p10), 1, %s1205_s19  }
  0x11   : > { %908 = vperm.xlu1 (!%p230_p10), %1133, %v294_v3   ;;  %462 = vmatprep.mubr.f32.mxu1 (!%p230_p10), %v1223_v0  ;;  %v749_v3 = vrot.slane (!%p230_p10), %v290_v1, 4  ;;  %s1042_s25 = sshll.u32 (!%p230_p10), %s266_s24, 4  ;;  %s1072_s27 = sshll.u32 (!%p230_p10), %s1213_s21, 8 }
  0x12   : > { %s268_s29 = scalar_lea.vmem (!%p230_p10), [#allocation2], %s1042_s25  ;;  %s1394_s10 = scalar_lea.hbm (!%p230_p10), %s1446_s5, %s1072_s27 }
  0x14   : > { %662 = vperm.xlu0 (!%p230_p10), %1132, %v293_v4   ;;  %v750_v4 = vrot.slane (!%p230_p10), %v291_v2, 4 }
  0x16   : > { %s1320_s11 = scalar_select %p270_p11, %s1213_s21, 1 }
  0x17   : > { %s1225_s21 = smov [#allocation2]  }
  0x18   : > { %s1071_s14 = sshll.u32 %s1320_s11, 3  ;;  %s1046_s8 = sshll.u32 %s1320_s11, 2 }
  0x19   : > { %s277_s17 = scalar_lea.vmem %s1441_s0, %s1071_s14  ;;  %s282_s7 = scalar_lea.vmem %s1442_s1, %s1071_s14 }
  0x1a   : > { %v1332_v5 = vld [vmem:[%s277_s17] sm:$0xff]  ;;  %s286_s12 = scalar_lea.vmem %s1443_s2, %s1046_s8  ;;  %s1147_s13 = sshll.u32 %s1225_s21, 4  ;;  %s1148_s13 = int_to_ptr.vmem [resolvable:$false] %s1147_s13 }
  0x1b   : > { %v1336_v6 = vcombine.high %v1332_v5, %v1332_v5  ;;  %v296_v23 = vld [vmem:[%s282_s7] sm:$0xff]  ;;  %s937_s7 = sshll.u32 %s268_s29, 4  ;;  %s1149_s14 = scalar_lea.vmem %s1148_s13, 512  ;;  %s1396_s7 = int_to_ptr.vmem [resolvable:$true] %s937_s7 }
  0x1c   : > { %v297_v60 = vld [vmem:[%s286_s12] sm:$0xf]  ;;  %s921_s12 = scalar_lea.sflag [#allocation3], %s266_s24  ;;  %s1143_s11 = scalar_lea.vmem %s1396_s7, 256 }
  0x1d   : > { %1047 = vmatprep.subr.msk.mxu0 %vm309_vm0, %v1336_v6  ;;  %p1144_p12 = scmp.ne.s32.totalorder %s1396_s7, %s1143_s11  ;;  %p1150_p1 = scmp.lt.s32.totalorder %s1396_s7, %s1148_s13 }
  0x1e   : > { %1048 = vmatpush1.msk.msra.mxu0 %vm309_vm0, %v1332_v5  ;;  %p1151_p2 = scmp.lt.s32.totalorder %s1149_s14, %s1143_s11 }
  0x1f   : > { %1049 = vmatmul.mubr.msk.f32.vlgmr.msra.gmra.mrb[0].mxu0 %vm305_vm1, %v288_v7  ;;  %p1145_p13 = pnand %p1144_p12, %p1296_p4 }
  0x20   : > { %544 = vmatprep.mubr.f32.mxu0 %v1223_v0  ;;  %p1152_p3 = por %p1151_p2, %p1150_p1 }
  0x21   : > { %p1146_p0 = pneg %p1145_p13 }
  0x23   : > { %p1153_p5 = pnand %p1152_p3, %p1146_p0 }
  0x8f   : > { %v301_v8 = vpop.permute.xlu0 %300 }
  0x90   : > { %v388_v16 = vrot.slane %v301_v8, 4 }
  0xf2   : > { %v380_v9 = vpop.f32.mrb[0].mxu0 }
  0xf3   : > { %v381_v10 = vadd.f32 %v380_v9, %v301_v8  ;;  %v382_v11 = vpop.f32.mrb[1].mxu0 }
  0xf4   : > { %v383_v12 = vadd.f32 %v382_v11, %v301_v8  ;;  %v825_v8 = vrot.slane %v289_v63, 4 }
  0xf5   : > { %v385_v15 = vmax.f32 %v381_v10, 0.0 }
  0xf6   : > { %v386_v14 = vmax.f32 %v383_v12, 0.0 }
  0xf8   : > { %1050 = vmatprep.subr.msk.mxu1 %vm309_vm0, %v386_v14  ;;  %v826_v14 = vsel %vm309_vm0, %v825_v8, %v749_v3 }
  0xf9   : > { %1051 = vmatpush1.msk.msra.mxu1 %vm309_vm0, %v385_v15  ;;  %v909_v15 = vpop.permute.xlu1 %908 }
  0xfa   : > { %1052 = vmatmul.mubr.msk.f32.vlgmr.msra.gmra.mrb[0].mxu1 %vm305_vm1, %v387_v13 }
  0xfb   : > { %653 = vmatprep.mubr.f32.mxu1 %v1223_v0 }
 0x1cd   : > { %v464_v17 = vpop.f32.mrb[0].mxu1 }
 0x1ce   : > { %v465_v18 = vadd.f32 %v464_v17, %v388_v16  ;;  %v466_v19 = vpop.f32.mrb[1].mxu1 }
 0x1cf   : > { %v467_v20 = vadd.f32 %v466_v19, %v388_v16 }
 0x1d0   : > { %v469_v22 = vmax.f32 %v465_v18, 0.0 }
 0x1d1   : > { %v470_v21 = vmax.f32 %v467_v20, 0.0 }
 0x1d3   : > { %1053 = vmatprep.subr.msk.mxu0 %vm309_vm0, %v470_v21 }
 0x1d4   : > { %1054 = vmatpush1.msk.msra.mxu0 %vm309_vm0, %v469_v22 }
 0x1d5   : > { %1055 = vmatmul.mubr.msk.f32.vlgmr.msra.gmra.mrb[2].mxu0 %vm305_vm1, %v296_v23 }
 0x1d6   : > { %738 = vmatprep.mubr.f32.mxu0 %v1223_v0 }
 0x2a8   : > { %v546_v24 = vpop.f32.mrb[2].mxu0 }
 0x2a9   : > { %v551_v25 = vrot.slane %v546_v24, 4  ;;  %v548_v26 = vpop.f32.mrb[3].mxu0 }
 0x2aa   : > { %v557_v27 = vrot.slane %v548_v26, 4 }
 0x2ab   : > { %v552_v28 = vmax.f32 %v546_v24, %v551_v25 }
 0x2ac   : > { %v558_v29 = vmax.f32 %v548_v26, %v557_v27 }
 0x2ad   : > { %v553_v30 = vrot.slane %v552_v28, 2 }
 0x2ae   : > { %v559_v31 = vrot.slane %v558_v29, 2 }
 0x2af   : > { %v554_v32 = vmax.f32 %v552_v28, %v553_v30 }
 0x2b0   : > { %v560_v33 = vmax.f32 %v558_v29, %v559_v31 }
 0x2b1   : > { %v555_v34 = vrot.slane %v554_v32, 1 }
 0x2b2   : > { %v561_v35 = vrot.slane %v560_v33, 1 }
 0x2b3   : > { %v556_v36 = vmax.f32 %v554_v32, %v555_v34 }
 0x2b4   : > { %v562_v37 = vmax.f32 %v560_v33, %v561_v35 }
 0x2b5   : > { %v563_v38 = vsub.f32 %v546_v24, %v556_v36 }
 0x2b6   : > { %v564_v39 = vsub.f32 %v548_v26, %v562_v37 }
 0x2b7   : > { %v565_v40 = vmul.f32 1.442695, %v563_v38 }
 0x2b8   : > { %v567_v41 = vmul.f32 1.442695, %v564_v39 }
 0x2b9   : > { %1135 = vpow2.f32 %v565_v40 }
 0x2ba   : > { %1137 = vpow2.f32 %v567_v41 }
 0x2c3   : > { %v1136_v42 = vpop.eup %1135 }
 0x2c4   : > { %v1138_v43 = vpop.eup %1137  ;;  %v569_v44 = vrot.slane %v1136_v42, 4 }
 0x2c5   : > { %v575_v45 = vrot.slane %v1138_v43, 4 }
 0x2c6   : > { %v570_v46 = vadd.f32 %v1136_v42, %v569_v44 }
 0x2c7   : > { %v576_v47 = vadd.f32 %v1138_v43, %v575_v45 }
 0x2c8   : > { %v571_v48 = vrot.slane %v570_v46, 2 }
 0x2c9   : > { %v577_v49 = vrot.slane %v576_v47, 2 }
 0x2ca   : > { %v572_v50 = vadd.f32 %v571_v48, %v570_v46 }
 0x2cb   : > { %v578_v51 = vadd.f32 %v577_v49, %v576_v47 }
 0x2cc   : > { %v573_v52 = vrot.slane %v572_v50, 1 }
 0x2cd   : > { %v579_v53 = vrot.slane %v578_v51, 1 }
 0x2ce   : > { %v574_v54 = vadd.f32 %v573_v52, %v572_v50 }
 0x2cf   : > { %v580_v55 = vadd.f32 %v579_v53, %v578_v51 }
 0x2d0   : > { %1139 = vrcp.f32 %v574_v54 }
 0x2d1   : > { %1141 = vrcp.f32 %v580_v55 }
 0x2da   : > { %v1140_v56 = vpop.eup %1139 }
 0x2db   : > { %v1142_v57 = vpop.eup %1141  ;;  %v582_v59 = vmul.f32 %v1140_v56, %v1136_v42 }
 0x2dc   : > { %v584_v58 = vmul.f32 %v1142_v57, %v1138_v43 }
 0x2de   : > { %589 = vmatprep.subr.mxu1 %v584_v58 }
 0x2df   : > { %590 = vmatpush1.msra.mxu1 %v582_v59 }
 0x2e0   : > { %1056 = vmatmul.mubr.msk.f32.vlgmr.msra.gmra.mrb[2].mxu1 %vm585_vm2, %v297_v60  ;;  %1060 = vmatprep.subr.msk.mxu1 %vm309_vm0, %v1336_v6  ;;  %v663_v6 = vpop.permute.xlu0 %662 }
 0x2e1   : > { %1061 = vmatpush1.msk.msra.mxu1 %vm309_vm0, %v1332_v5  ;;  %818 = vmatprep.mubr.f32.mxu1 %v1223_v0  ;;  %v751_v5 = vsel %vm309_vm0, %v749_v3, %v750_v4  ;;  %v910_v16 = vrot.slane %v663_v6, 4 }
 0x2e4   : > { %1062 = vmatmul.mubr.msk.f32.vlgmr.msra.gmra.mrb[4].mxu1 %vm305_vm1, %v751_v5 }
 0x2e5   : > { %899 = vmatprep.mubr.f32.mxu1 %v1223_v0  ;;  %v911_v0 = vrot.slane %v909_v15, 4 }
 0x2e7   : > { %v912_v18 = vsel %vm309_vm0, %v910_v16, %v911_v0 }
 0x3b3   : > { %v655_v61 = vpop.f32.mrb[2].mxu1 }
 0x3b4   : > { %v657_v62 = vpop.f32.mrb[3].mxu1 }
 0x3b5   : > { %1057 = vmatprep.subr.msk.mxu0 %vm309_vm0, %v657_v62 }
 0x3b6   : > { %1058 = vmatpush1.msk.msra.mxu0 %vm309_vm0, %v655_v61 }
 0x3b7   : > { %1059 = vmatmul.mubr.msk.f32.vlgmr.msra.gmra.mrb[4].mxu0 %vm305_vm1, %v289_v63 }
 0x48a   : > { %v740_v7 = vpop.f32.mrb[4].mxu0 }
 0x48b   : > { %v741_v9 = vadd.f32 %v740_v7, %v663_v6  ;;  %v742_v10 = vpop.f32.mrb[5].mxu0 }
 0x48c   : > { %v743_v11 = vadd.f32 %v742_v10, %v663_v6 }
 0x48d   : > { %v745_v13 = vmax.f32 %v741_v9, 0.0 }
 0x48e   : > { %v746_v12 = vmax.f32 %v743_v11, 0.0 }
 0x490   : > { %1063 = vmatprep.subr.msk.mxu1 %vm309_vm0, %v746_v12 }
 0x491   : > { %1064 = vmatpush1.msk.msra.mxu1 %vm309_vm0, %v745_v13 }
 0x492   : > { %1065 = vmatmul.mubr.msk.f32.vlgmr.msra.gmra.mrb[4].mxu1 %vm305_vm1, %v826_v14 }
 0x565   : > { %v901_v17 = vpop.f32.mrb[4].mxu1 }
 0x566   : > { %v914_v19 = vadd.f32 %v912_v18, %v901_v17  ;;  %v903_v20 = vpop.f32.mrb[5].mxu1 }
 0x567   : > { %v915_v21 = vadd.f32 %v912_v18, %v903_v20 }
 0x568   : > { %v916_v22 = vmax.f32 %v914_v19, 0.0 }
 0x569   : > { %v917_v23 = vmax.f32 %v915_v21, 0.0 }
 0x56a   : > { %918 = vst [vmem:[%s268_s29] sm:$0xff] %v916_v22 }
 0x56b   : > { %919 = vst [vmem:[%s268_s29 + $0x8] sm:$0xff] %v917_v23 }
 0x56c   : > { %1156 = shalt.err (!%p1153_p5)
}
 0x56d   : > { %s1157_s15 = scalar_lea.hbm %s1394_s10, 256  ;;  %s1161_s24 = scalar_lea.hbm %s1446_s5, 512 }
 0x56e   : > { %p1158_p6 = scmp.ne.s32.totalorder %s1394_s10, %s1157_s15  ;;  %p1162_p10 = scmp.lt.u32.totalorder %s1394_s10, %s1446_s5 }
 0x56f   : > { %p1163_p11 = scmp.lt.u32.totalorder %s1161_s24, %s1157_s15  ;;  %p1165_p13 = scmp.lt.u32.totalorder %s1157_s15, %s1394_s10 }
 0x570   : > { %p1159_p7 = pnand %p1158_p6, %p1296_p4 }
 0x571   : > { %p1164_p12 = por %p1163_p11, %p1162_p10 }
 0x572   : > { %p1160_p9 = pneg %p1159_p7 }
 0x573   : > { %p1166_p0 = por %p1165_p13, %p1164_p12 }
 0x575   : > { %p1167_p1 = pnand %p1166_p0, %p1160_p9 }
 0x577   : > { %1170 = shalt.err (!%p1167_p1)
}
 0x578   : > { %1075 = dma.vmem_to_hbm [thread:$0]  (%p1296_p4), %s1396_s7, 256, %s1394_s10, %s921_s12  }
 0x579 PF: > { %p1081_p2 = scmp.ge.s32.totalorder %s1221_s23, 2  ;;  %s949_s29 = sand.u32 1, %s1201_s18  }
 0x57a   : > { %s950_s8 = scalar_lea.sflag [#allocation3], %s949_s29 }
 0x57b   : > { %p1078_p3 = pnand %p1081_p2, %p1303_p8 }
 0x57d   : > { %1196 = dma.done.wait (!%p1078_p3), %s950_s8, 256  }
 0x57e   : > { %1198 = vsyncadd (!%p1078_p3), %s950_s8, 4294967040  ;;  %s18_s23 = sadd.s32 1, %s1221_s23   ;;  %s1449_s18 = smov %s1205_s19 }
 0x57f   : > { %p15_p5 = scmp.ge.s32.totalorder %s18_s23, 4   ;;  %s1450_s19 = smov %s1209_s20 }
 0x580   : > { %s1451_s20 = smov %s1309_s6  ;;  %s1452_s21 = smov %s1217_s22 }
 0x581   : > { %s1453_s22 = smov %s1455_s26  ;;  %17 = sbr.rel (!%p15_p5) target bundleno = 4 (0x4), region = 81 }
 0x588   :  { %955 = vsyncpa [#allocation3], 1 }
 0x589   :  { %957 = vsyncpa [#allocation3 + $0x1], 1 }

</bundles_post_ra>
